<compile_context>
chip_gen: v7x
topology: tpu7x:2x2x1
jax: 0.10.0
libtpu: 0.0.40
codegen_flags: <defaults>
</compile_context>

<pallas_src>
import jax
import jax.numpy as jnp
from jax.experimental import pallas as pl
from jax.experimental.pallas import tpu as pltpu

# TODO(synk): `other` is an undefined free variable in the original module's
# forward(); we pin it to a deterministic scalar constant 1.0 here.
OTHER = 1.0


def conv1x1_pad_sub_kernel(w_ref, b_ref, x_ref, o_ref):
    """1x1 conv with padding=1, minus `other`, pad folded into the kernel.

    w_ref: SMEM (Cout, Cin)        float32 weight scalars
    b_ref: SMEM (Cout,)            float32, already (bias - other)
    x_ref: VMEM (N, Cin, H, W)     un-padded activations
    o_ref: VMEM (N, Cout, H+2, W+2)
    """
    n_img, cin, h, w = x_ref.shape
    _, cout, hp, wp = o_ref.shape

    for n in range(n_img):                      # N = 2, static unroll
        x = x_ref[n]                            # (Cin, H, W): one load, reused
        for o in range(cout):                   # Cout = 5, static unroll
            b = b_ref[o]
            # Border of a zero-padded 1x1 conv is just (bias - other):
            # initialize the whole plane, then overwrite the interior.
            o_ref[n, o] = jnp.full((hp, wp), b, dtype=o_ref.dtype)
            acc = x[0] * w_ref[o, 0]
            for c in range(1, cin):             # Cin = 3 -> 3 VPU FMAs / plane
                acc = acc + x[c] * w_ref[o, c]
            # Interior sub-window store at static offset (1, 1).
            o_ref[n, o, 1:h + 1, 1:w + 1] = acc + b


def model_forward(x_nchw, weight, bias):
    """Equivalent of Model.forward: Conv2d(3->5, k=1, s=1, p=1)(x) - OTHER."""
    N, Cin, H, W = x_nchw.shape
    Cout = weight.shape[0]
    Hp, Wp = H + 2, W + 2

    w_mat = weight.reshape(Cout, Cin).astype(jnp.float32)     # 15 scalars
    b_adj = bias.astype(jnp.float32) - jnp.float32(OTHER)     # fold `other`

    out = pl.pallas_call(
        conv1x1_pad_sub_kernel,
        out_shape=jax.ShapeDtypeStruct((N, Cout, Hp, Wp), jnp.float32),
        in_specs=[
            pl.BlockSpec(memory_space=pltpu.MemorySpace.SMEM),   # weights
            pl.BlockSpec(memory_space=pltpu.MemorySpace.SMEM),   # bias - other
            pl.BlockSpec(memory_space=pltpu.MemorySpace.VMEM),   # x (whole)
        ],
        out_specs=pl.BlockSpec(memory_space=pltpu.MemorySpace.VMEM),
        cost_estimate=pl.CostEstimate(
            flops=2 * N * Cout * Cin * H * W,
            transcendentals=0,
            bytes_accessed=4 * (N * Cin * H * W + N * Cout * Hp * Wp),
        ),
    )(w_mat, b_adj, x_nchw.astype(jnp.float32))

    return out


model_forward_jit = jax.jit(model_forward)


if __name__ == "__main__":
    key = jax.random.PRNGKey(0)
    k_x, k_w, k_b = jax.random.split(key, 3)

    # Small shapes consistent with the module: batch=2, Cin=3, Cout=5, 16x16.
    N, Cin, Cout, H, W = 2, 3, 5, 16, 16

    x = jax.random.normal(k_x, (N, Cin, H, W), dtype=jnp.float32)
    weight = jax.random.normal(k_w, (Cout, Cin, 1, 1), dtype=jnp.float32) * 0.1
    bias = jax.random.normal(k_b, (Cout,), dtype=jnp.float32) * 0.1

    out = jax.block_until_ready(model_forward_jit(x, weight, bias))

    # Pure-JAX reference (broadcast-multiply + sum: exact f32, no MXU).
    w2 = weight.reshape(Cout, Cin)
    x_pad = jnp.pad(x, ((0, 0), (0, 0), (1, 1), (1, 1)))
    ref = (x_pad[:, None, :, :, :] * w2[None, :, :, None, None]).sum(axis=2)
    ref = ref + bias.reshape(1, Cout, 1, 1) - OTHER

    assert out.shape == (N, Cout, H + 2, W + 2), out.shape
    assert jnp.allclose(out, ref, atol=1e-5, rtol=1e-5), float(
        jnp.max(jnp.abs(out - ref)))

    print("KERNEL_OK")
</pallas_src>

<mosaic_0001>
module attributes {stable_mosaic.version = 11 : i64} {
  func.func @conv1x1_pad_sub_kernel(%arg0: memref<5x3xf32, #tpu.memory_space<smem>>, %arg1: memref<5xf32, #tpu.memory_space<smem>>, %arg2: memref<2x3x16x16xf32, #tpu.memory_space<vmem>>, %arg3: memref<2x5x18x18xf32, #tpu.memory_space<vmem>>) attributes {dimension_semantics = [], scalar_prefetch = 0 : i64, scratch_operands = 0 : i64, tpu.core_type = #tpu.core_type<tc>} {
    %c0 = arith.constant 0 : index
    %c0_0 = arith.constant 0 : index
    %c0_1 = arith.constant 0 : index
    %c0_2 = arith.constant 0 : index
    %0 = vector.load %arg2[%c0, %c0_0, %c0_1, %c0_2] : memref<2x3x16x16xf32, #tpu.memory_space<vmem>>, vector<1x3x16x16xf32>
    %1 = vector.shape_cast %0 : vector<1x3x16x16xf32> to vector<3x16x16xf32>
    %c0_3 = arith.constant 0 : index
    %2 = memref.load %arg1[%c0_3] : memref<5xf32, #tpu.memory_space<smem>>
    %3 = vector.broadcast %2 : f32 to vector<18x18xf32>
    %c0_4 = arith.constant 0 : index
    %c0_5 = arith.constant 0 : index
    %c0_6 = arith.constant 0 : index
    %c0_7 = arith.constant 0 : index
    %4 = vector.load %arg3[%c0_4, %c0_5, %c0_6, %c0_7] : memref<2x5x18x18xf32, #tpu.memory_space<vmem>>, vector<1x1x18x18xf32>
    %5 = vector.shape_cast %4 : vector<1x1x18x18xf32> to vector<18x18xf32>
    %6 = vector.shape_cast %3 : vector<18x18xf32> to vector<1x1x18x18xf32>
    tpu.vector_store %arg3[%c0_4, %c0_5, %c0_6, %c0_7], %6 {strides = array<i32>} : memref<2x5x18x18xf32, #tpu.memory_space<vmem>>, vector<1x1x18x18xf32>,
    %7 = vector.extract_strided_slice %1 {offsets = [0, 0, 0], sizes = [1, 16, 16], strides = [1, 1, 1]} : vector<3x16x16xf32> to vector<1x16x16xf32>
    %8 = vector.shape_cast %7 : vector<1x16x16xf32> to vector<16x16xf32>
    %c0_8 = arith.constant 0 : index
    %c0_9 = arith.constant 0 : index
    %9 = memref.load %arg0[%c0_8, %c0_9] : memref<5x3xf32, #tpu.memory_space<smem>>
    %10 = vector.broadcast %9 : f32 to vector<16x16xf32>
    %11 = arith.mulf %8, %10 : vector<16x16xf32>
    %12 = vector.extract_strided_slice %1 {offsets = [1, 0, 0], sizes = [1, 16, 16], strides = [1, 1, 1]} : vector<3x16x16xf32> to vector<1x16x16xf32>
    %13 = vector.shape_cast %12 : vector<1x16x16xf32> to vector<16x16xf32>
    %c0_10 = arith.constant 0 : index
    %c1 = arith.constant 1 : index
    %14 = memref.load %arg0[%c0_10, %c1] : memref<5x3xf32, #tpu.memory_space<smem>>
    %15 = vector.broadcast %14 : f32 to vector<16x16xf32>
    %16 = arith.mulf %13, %15 : vector<16x16xf32>
    %17 = arith.addf %11, %16 : vector<16x16xf32>
    %18 = vector.extract_strided_slice %1 {offsets = [2, 0, 0], sizes = [1, 16, 16], strides = [1, 1, 1]} : vector<3x16x16xf32> to vector<1x16x16xf32>
    %19 = vector.shape_cast %18 : vector<1x16x16xf32> to vector<16x16xf32>
    %c0_11 = arith.constant 0 : index
    %c2 = arith.constant 2 : index
    %20 = memref.load %arg0[%c0_11, %c2] : memref<5x3xf32, #tpu.memory_space<smem>>
    %21 = vector.broadcast %20 : f32 to vector<16x16xf32>
    %22 = arith.mulf %19, %21 : vector<16x16xf32>
    %23 = arith.addf %17, %22 : vector<16x16xf32>
    %24 = vector.broadcast %2 : f32 to vector<16x16xf32>
    %25 = arith.addf %23, %24 : vector<16x16xf32>
    %c0_12 = arith.constant 0 : index
    %c0_13 = arith.constant 0 : index
    %c1_14 = arith.constant 1 : index
    %c1_15 = arith.constant 1 : index
    %26 = vector.load %arg3[%c0_12, %c0_13, %c1_14, %c1_15] : memref<2x5x18x18xf32, #tpu.memory_space<vmem>>, vector<1x1x16x16xf32>
    %27 = vector.shape_cast %26 : vector<1x1x16x16xf32> to vector<16x16xf32>
    %28 = vector.shape_cast %25 : vector<16x16xf32> to vector<1x1x16x16xf32>
    tpu.vector_store %arg3[%c0_12, %c0_13, %c1_14, %c1_15], %28 {strides = array<i32>} : memref<2x5x18x18xf32, #tpu.memory_space<vmem>>, vector<1x1x16x16xf32>,
    %c1_16 = arith.constant 1 : index
    %29 = memref.load %arg1[%c1_16] : memref<5xf32, #tpu.memory_space<smem>>
    %30 = vector.broadcast %29 : f32 to vector<18x18xf32>
    %c0_17 = arith.constant 0 : index
    %c1_18 = arith.constant 1 : index
    %c0_19 = arith.constant 0 : index
    %c0_20 = arith.constant 0 : index
    %31 = vector.load %arg3[%c0_17, %c1_18, %c0_19, %c0_20] : memref<2x5x18x18xf32, #tpu.memory_space<vmem>>, vector<1x1x18x18xf32>
    %32 = vector.shape_cast %31 : vector<1x1x18x18xf32> to vector<18x18xf32>
    %33 = vector.shape_cast %30 : vector<18x18xf32> to vector<1x1x18x18xf32>
    tpu.vector_store %arg3[%c0_17, %c1_18, %c0_19, %c0_20], %33 {strides = array<i32>} : memref<2x5x18x18xf32, #tpu.memory_space<vmem>>, vector<1x1x18x18xf32>,
    %34 = vector.extract_strided_slice %1 {offsets = [0, 0, 0], sizes = [1, 16, 16], strides = [1, 1, 1]} : vector<3x16x16xf32> to vector<1x16x16xf32>
    %35 = vector.shape_cast %34 : vector<1x16x16xf32> to vector<16x16xf32>
    %c1_21 = arith.constant 1 : index
    %c0_22 = arith.constant 0 : index
    %36 = memref.load %arg0[%c1_21, %c0_22] : memref<5x3xf32, #tpu.memory_space<smem>>
    %37 = vector.broadcast %36 : f32 to vector<16x16xf32>
    %38 = arith.mulf %35, %37 : vector<16x16xf32>
    %39 = vector.extract_strided_slice %1 {offsets = [1, 0, 0], sizes = [1, 16, 16], strides = [1, 1, 1]} : vector<3x16x16xf32> to vector<1x16x16xf32>
    %40 = vector.shape_cast %39 : vector<1x16x16xf32> to vector<16x16xf32>
    %c1_23 = arith.constant 1 : index
    %c1_24 = arith.constant 1 : index
    %41 = memref.load %arg0[%c1_23, %c1_24] : memref<5x3xf32, #tpu.memory_space<smem>>
    %42 = vector.broadcast %41 : f32 to vector<16x16xf32>
    %43 = arith.mulf %40, %42 : vector<16x16xf32>
    %44 = arith.addf %38, %43 : vector<16x16xf32>
    %45 = vector.extract_strided_slice %1 {offsets = [2, 0, 0], sizes = [1, 16, 16], strides = [1, 1, 1]} : vector<3x16x16xf32> to vector<1x16x16xf32>
    %46 = vector.shape_cast %45 : vector<1x16x16xf32> to vector<16x16xf32>
    %c1_25 = arith.constant 1 : index
    %c2_26 = arith.constant 2 : index
    %47 = memref.load %arg0[%c1_25, %c2_26] : memref<5x3xf32, #tpu.memory_space<smem>>
    %48 = vector.broadcast %47 : f32 to vector<16x16xf32>
    %49 = arith.mulf %46, %48 : vector<16x16xf32>
    %50 = arith.addf %44, %49 : vector<16x16xf32>
    %51 = vector.broadcast %29 : f32 to vector<16x16xf32>
    %52 = arith.addf %50, %51 : vector<16x16xf32>
    %c0_27 = arith.constant 0 : index
    %c1_28 = arith.constant 1 : index
    %c1_29 = arith.constant 1 : index
    %c1_30 = arith.constant 1 : index
    %53 = vector.load %arg3[%c0_27, %c1_28, %c1_29, %c1_30] : memref<2x5x18x18xf32, #tpu.memory_space<vmem>>, vector<1x1x16x16xf32>
    %54 = vector.shape_cast %53 : vector<1x1x16x16xf32> to vector<16x16xf32>
    %55 = vector.shape_cast %52 : vector<16x16xf32> to vector<1x1x16x16xf32>
    tpu.vector_store %arg3[%c0_27, %c1_28, %c1_29, %c1_30], %55 {strides = array<i32>} : memref<2x5x18x18xf32, #tpu.memory_space<vmem>>, vector<1x1x16x16xf32>,
    %c2_31 = arith.constant 2 : index
    %56 = memref.load %arg1[%c2_31] : memref<5xf32, #tpu.memory_space<smem>>
    %57 = vector.broadcast %56 : f32 to vector<18x18xf32>
    %c0_32 = arith.constant 0 : index
    %c2_33 = arith.constant 2 : index
    %c0_34 = arith.constant 0 : index
    %c0_35 = arith.constant 0 : index
    %58 = vector.load %arg3[%c0_32, %c2_33, %c0_34, %c0_35] : memref<2x5x18x18xf32, #tpu.memory_space<vmem>>, vector<1x1x18x18xf32>
    %59 = vector.shape_cast %58 : vector<1x1x18x18xf32> to vector<18x18xf32>
    %60 = vector.shape_cast %57 : vector<18x18xf32> to vector<1x1x18x18xf32>
    tpu.vector_store %arg3[%c0_32, %c2_33, %c0_34, %c0_35], %60 {strides = array<i32>} : memref<2x5x18x18xf32, #tpu.memory_space<vmem>>, vector<1x1x18x18xf32>,
    %61 = vector.extract_strided_slice %1 {offsets = [0, 0, 0], sizes = [1, 16, 16], strides = [1, 1, 1]} : vector<3x16x16xf32> to vector<1x16x16xf32>
    %62 = vector.shape_cast %61 : vector<1x16x16xf32> to vector<16x16xf32>
    %c2_36 = arith.constant 2 : index
    %c0_37 = arith.constant 0 : index
    %63 = memref.load %arg0[%c2_36, %c0_37] : memref<5x3xf32, #tpu.memory_space<smem>>
    %64 = vector.broadcast %63 : f32 to vector<16x16xf32>
    %65 = arith.mulf %62, %64 : vector<16x16xf32>
    %66 = vector.extract_strided_slice %1 {offsets = [1, 0, 0], sizes = [1, 16, 16], strides = [1, 1, 1]} : vector<3x16x16xf32> to vector<1x16x16xf32>
    %67 = vector.shape_cast %66 : vector<1x16x16xf32> to vector<16x16xf32>
    %c2_38 = arith.constant 2 : index
    %c1_39 = arith.constant 1 : index
    %68 = memref.load %arg0[%c2_38, %c1_39] : memref<5x3xf32, #tpu.memory_space<smem>>
    %69 = vector.broadcast %68 : f32 to vector<16x16xf32>
    %70 = arith.mulf %67, %69 : vector<16x16xf32>
    %71 = arith.addf %65, %70 : vector<16x16xf32>
    %72 = vector.extract_strided_slice %1 {offsets = [2, 0, 0], sizes = [1, 16, 16], strides = [1, 1, 1]} : vector<3x16x16xf32> to vector<1x16x16xf32>
    %73 = vector.shape_cast %72 : vector<1x16x16xf32> to vector<16x16xf32>
    %c2_40 = arith.constant 2 : index
    %c2_41 = arith.constant 2 : index
    %74 = memref.load %arg0[%c2_40, %c2_41] : memref<5x3xf32, #tpu.memory_space<smem>>
    %75 = vector.broadcast %74 : f32 to vector<16x16xf32>
    %76 = arith.mulf %73, %75 : vector<16x16xf32>
    %77 = arith.addf %71, %76 : vector<16x16xf32>
    %78 = vector.broadcast %56 : f32 to vector<16x16xf32>
    %79 = arith.addf %77, %78 : vector<16x16xf32>
    %c0_42 = arith.constant 0 : index
    %c2_43 = arith.constant 2 : index
    %c1_44 = arith.constant 1 : index
    %c1_45 = arith.constant 1 : index
    %80 = vector.load %arg3[%c0_42, %c2_43, %c1_44, %c1_45] : memref<2x5x18x18xf32, #tpu.memory_space<vmem>>, vector<1x1x16x16xf32>
    %81 = vector.shape_cast %80 : vector<1x1x16x16xf32> to vector<16x16xf32>
    %82 = vector.shape_cast %79 : vector<16x16xf32> to vector<1x1x16x16xf32>
    tpu.vector_store %arg3[%c0_42, %c2_43, %c1_44, %c1_45], %82 {strides = array<i32>} : memref<2x5x18x18xf32, #tpu.memory_space<vmem>>, vector<1x1x16x16xf32>,
    %c3 = arith.constant 3 : index
    %83 = memref.load %arg1[%c3] : memref<5xf32, #tpu.memory_space<smem>>
    %84 = vector.broadcast %83 : f32 to vector<18x18xf32>
    %c0_46 = arith.constant 0 : index
    %c3_47 = arith.constant 3 : index
    %c0_48 = arith.constant 0 : index
    %c0_49 = arith.constant 0 : index
    %85 = vector.load %arg3[%c0_46, %c3_47, %c0_48, %c0_49] : memref<2x5x18x18xf32, #tpu.memory_space<vmem>>, vector<1x1x18x18xf32>
    %86 = vector.shape_cast %85 : vector<1x1x18x18xf32> to vector<18x18xf32>
    %87 = vector.shape_cast %84 : vector<18x18xf32> to vector<1x1x18x18xf32>
    tpu.vector_store %arg3[%c0_46, %c3_47, %c0_48, %c0_49], %87 {strides = array<i32>} : memref<2x5x18x18xf32, #tpu.memory_space<vmem>>, vector<1x1x18x18xf32>,
    %88 = vector.extract_strided_slice %1 {offsets = [0, 0, 0], sizes = [1, 16, 16], strides = [1, 1, 1]} : vector<3x16x16xf32> to vector<1x16x16xf32>
    %89 = vector.shape_cast %88 : vector<1x16x16xf32> to vector<16x16xf32>
    %c3_50 = arith.constant 3 : index
    %c0_51 = arith.constant 0 : index
    %90 = memref.load %arg0[%c3_50, %c0_51] : memref<5x3xf32, #tpu.memory_space<smem>>
    %91 = vector.broadcast %90 : f32 to vector<16x16xf32>
    %92 = arith.mulf %89, %91 : vector<16x16xf32>
    %93 = vector.extract_strided_slice %1 {offsets = [1, 0, 0], sizes = [1, 16, 16], strides = [1, 1, 1]} : vector<3x16x16xf32> to vector<1x16x16xf32>
    %94 = vector.shape_cast %93 : vector<1x16x16xf32> to vector<16x16xf32>
    %c3_52 = arith.constant 3 : index
    %c1_53 = arith.constant 1 : index
    %95 = memref.load %arg0[%c3_52, %c1_53] : memref<5x3xf32, #tpu.memory_space<smem>>
    %96 = vector.broadcast %95 : f32 to vector<16x16xf32>
    %97 = arith.mulf %94, %96 : vector<16x16xf32>
    %98 = arith.addf %92, %97 : vector<16x16xf32>
    %99 = vector.extract_strided_slice %1 {offsets = [2, 0, 0], sizes = [1, 16, 16], strides = [1, 1, 1]} : vector<3x16x16xf32> to vector<1x16x16xf32>
    %100 = vector.shape_cast %99 : vector<1x16x16xf32> to vector<16x16xf32>
    %c3_54 = arith.constant 3 : index
    %c2_55 = arith.constant 2 : index
    %101 = memref.load %arg0[%c3_54, %c2_55] : memref<5x3xf32, #tpu.memory_space<smem>>
    %102 = vector.broadcast %101 : f32 to vector<16x16xf32>
    %103 = arith.mulf %100, %102 : vector<16x16xf32>
    %104 = arith.addf %98, %103 : vector<16x16xf32>
    %105 = vector.broadcast %83 : f32 to vector<16x16xf32>
    %106 = arith.addf %104, %105 : vector<16x16xf32>
    %c0_56 = arith.constant 0 : index
    %c3_57 = arith.constant 3 : index
    %c1_58 = arith.constant 1 : index
    %c1_59 = arith.constant 1 : index
    %107 = vector.load %arg3[%c0_56, %c3_57, %c1_58, %c1_59] : memref<2x5x18x18xf32, #tpu.memory_space<vmem>>, vector<1x1x16x16xf32>
    %108 = vector.shape_cast %107 : vector<1x1x16x16xf32> to vector<16x16xf32>
    %109 = vector.shape_cast %106 : vector<16x16xf32> to vector<1x1x16x16xf32>
    tpu.vector_store %arg3[%c0_56, %c3_57, %c1_58, %c1_59], %109 {strides = array<i32>} : memref<2x5x18x18xf32, #tpu.memory_space<vmem>>, vector<1x1x16x16xf32>,
    %c4 = arith.constant 4 : index
    %110 = memref.load %arg1[%c4] : memref<5xf32, #tpu.memory_space<smem>>
    %111 = vector.broadcast %110 : f32 to vector<18x18xf32>
    %c0_60 = arith.constant 0 : index
    %c4_61 = arith.constant 4 : index
    %c0_62 = arith.constant 0 : index
    %c0_63 = arith.constant 0 : index
    %112 = vector.load %arg3[%c0_60, %c4_61, %c0_62, %c0_63] : memref<2x5x18x18xf32, #tpu.memory_space<vmem>>, vector<1x1x18x18xf32>
    %113 = vector.shape_cast %112 : vector<1x1x18x18xf32> to vector<18x18xf32>
    %114 = vector.shape_cast %111 : vector<18x18xf32> to vector<1x1x18x18xf32>
    tpu.vector_store %arg3[%c0_60, %c4_61, %c0_62, %c0_63], %114 {strides = array<i32>} : memref<2x5x18x18xf32, #tpu.memory_space<vmem>>, vector<1x1x18x18xf32>,
    %115 = vector.extract_strided_slice %1 {offsets = [0, 0, 0], sizes = [1, 16, 16], strides = [1, 1, 1]} : vector<3x16x16xf32> to vector<1x16x16xf32>
    %116 = vector.shape_cast %115 : vector<1x16x16xf32> to vector<16x16xf32>
    %c4_64 = arith.constant 4 : index
    %c0_65 = arith.constant 0 : index
    %117 = memref.load %arg0[%c4_64, %c0_65] : memref<5x3xf32, #tpu.memory_space<smem>>
    %118 = vector.broadcast %117 : f32 to vector<16x16xf32>
    %119 = arith.mulf %116, %118 : vector<16x16xf32>
    %120 = vector.extract_strided_slice %1 {offsets = [1, 0, 0], sizes = [1, 16, 16], strides = [1, 1, 1]} : vector<3x16x16xf32> to vector<1x16x16xf32>
    %121 = vector.shape_cast %120 : vector<1x16x16xf32> to vector<16x16xf32>
    %c4_66 = arith.constant 4 : index
    %c1_67 = arith.constant 1 : index
    %122 = memref.load %arg0[%c4_66, %c1_67] : memref<5x3xf32, #tpu.memory_space<smem>>
    %123 = vector.broadcast %122 : f32 to vector<16x16xf32>
    %124 = arith.mulf %121, %123 : vector<16x16xf32>
    %125 = arith.addf %119, %124 : vector<16x16xf32>
    %126 = vector.extract_strided_slice %1 {offsets = [2, 0, 0], sizes = [1, 16, 16], strides = [1, 1, 1]} : vector<3x16x16xf32> to vector<1x16x16xf32>
    %127 = vector.shape_cast %126 : vector<1x16x16xf32> to vector<16x16xf32>
    %c4_68 = arith.constant 4 : index
    %c2_69 = arith.constant 2 : index
    %128 = memref.load %arg0[%c4_68, %c2_69] : memref<5x3xf32, #tpu.memory_space<smem>>
    %129 = vector.broadcast %128 : f32 to vector<16x16xf32>
    %130 = arith.mulf %127, %129 : vector<16x16xf32>
    %131 = arith.addf %125, %130 : vector<16x16xf32>
    %132 = vector.broadcast %110 : f32 to vector<16x16xf32>
    %133 = arith.addf %131, %132 : vector<16x16xf32>
    %c0_70 = arith.constant 0 : index
    %c4_71 = arith.constant 4 : index
    %c1_72 = arith.constant 1 : index
    %c1_73 = arith.constant 1 : index
    %134 = vector.load %arg3[%c0_70, %c4_71, %c1_72, %c1_73] : memref<2x5x18x18xf32, #tpu.memory_space<vmem>>, vector<1x1x16x16xf32>
    %135 = vector.shape_cast %134 : vector<1x1x16x16xf32> to vector<16x16xf32>
    %136 = vector.shape_cast %133 : vector<16x16xf32> to vector<1x1x16x16xf32>
    tpu.vector_store %arg3[%c0_70, %c4_71, %c1_72, %c1_73], %136 {strides = array<i32>} : memref<2x5x18x18xf32, #tpu.memory_space<vmem>>, vector<1x1x16x16xf32>,
    %c1_74 = arith.constant 1 : index
    %c0_75 = arith.constant 0 : index
    %c0_76 = arith.constant 0 : index
    %c0_77 = arith.constant 0 : index
    %137 = vector.load %arg2[%c1_74, %c0_75, %c0_76, %c0_77] : memref<2x3x16x16xf32, #tpu.memory_space<vmem>>, vector<1x3x16x16xf32>
    %138 = vector.shape_cast %137 : vector<1x3x16x16xf32> to vector<3x16x16xf32>
    %c0_78 = arith.constant 0 : index
    %139 = memref.load %arg1[%c0_78] : memref<5xf32, #tpu.memory_space<smem>>
    %140 = vector.broadcast %139 : f32 to vector<18x18xf32>
    %c1_79 = arith.constant 1 : index
    %c0_80 = arith.constant 0 : index
    %c0_81 = arith.constant 0 : index
    %c0_82 = arith.constant 0 : index
    %141 = vector.load %arg3[%c1_79, %c0_80, %c0_81, %c0_82] : memref<2x5x18x18xf32, #tpu.memory_space<vmem>>, vector<1x1x18x18xf32>
    %142 = vector.shape_cast %141 : vector<1x1x18x18xf32> to vector<18x18xf32>
    %143 = vector.shape_cast %140 : vector<18x18xf32> to vector<1x1x18x18xf32>
    tpu.vector_store %arg3[%c1_79, %c0_80, %c0_81, %c0_82], %143 {strides = array<i32>} : memref<2x5x18x18xf32, #tpu.memory_space<vmem>>, vector<1x1x18x18xf32>,
    %144 = vector.extract_strided_slice %138 {offsets = [0, 0, 0], sizes = [1, 16, 16], strides = [1, 1, 1]} : vector<3x16x16xf32> to vector<1x16x16xf32>
    %145 = vector.shape_cast %144 : vector<1x16x16xf32> to vector<16x16xf32>
    %c0_83 = arith.constant 0 : index
    %c0_84 = arith.constant 0 : index
    %146 = memref.load %arg0[%c0_83, %c0_84] : memref<5x3xf32, #tpu.memory_space<smem>>
    %147 = vector.broadcast %146 : f32 to vector<16x16xf32>
    %148 = arith.mulf %145, %147 : vector<16x16xf32>
    %149 = vector.extract_strided_slice %138 {offsets = [1, 0, 0], sizes = [1, 16, 16], strides = [1, 1, 1]} : vector<3x16x16xf32> to vector<1x16x16xf32>
    %150 = vector.shape_cast %149 : vector<1x16x16xf32> to vector<16x16xf32>
    %c0_85 = arith.constant 0 : index
    %c1_86 = arith.constant 1 : index
    %151 = memref.load %arg0[%c0_85, %c1_86] : memref<5x3xf32, #tpu.memory_space<smem>>
    %152 = vector.broadcast %151 : f32 to vector<16x16xf32>
    %153 = arith.mulf %150, %152 : vector<16x16xf32>
    %154 = arith.addf %148, %153 : vector<16x16xf32>
    %155 = vector.extract_strided_slice %138 {offsets = [2, 0, 0], sizes = [1, 16, 16], strides = [1, 1, 1]} : vector<3x16x16xf32> to vector<1x16x16xf32>
    %156 = vector.shape_cast %155 : vector<1x16x16xf32> to vector<16x16xf32>
    %c0_87 = arith.constant 0 : index
    %c2_88 = arith.constant 2 : index
    %157 = memref.load %arg0[%c0_87, %c2_88] : memref<5x3xf32, #tpu.memory_space<smem>>
    %158 = vector.broadcast %157 : f32 to vector<16x16xf32>
    %159 = arith.mulf %156, %158 : vector<16x16xf32>
    %160 = arith.addf %154, %159 : vector<16x16xf32>
    %161 = vector.broadcast %139 : f32 to vector<16x16xf32>
    %162 = arith.addf %160, %161 : vector<16x16xf32>
    %c1_89 = arith.constant 1 : index
    %c0_90 = arith.constant 0 : index
    %c1_91 = arith.constant 1 : index
    %c1_92 = arith.constant 1 : index
    %163 = vector.load %arg3[%c1_89, %c0_90, %c1_91, %c1_92] : memref<2x5x18x18xf32, #tpu.memory_space<vmem>>, vector<1x1x16x16xf32>
    %164 = vector.shape_cast %163 : vector<1x1x16x16xf32> to vector<16x16xf32>
    %165 = vector.shape_cast %162 : vector<16x16xf32> to vector<1x1x16x16xf32>
    tpu.vector_store %arg3[%c1_89, %c0_90, %c1_91, %c1_92], %165 {strides = array<i32>} : memref<2x5x18x18xf32, #tpu.memory_space<vmem>>, vector<1x1x16x16xf32>,
    %c1_93 = arith.constant 1 : index
    %166 = memref.load %arg1[%c1_93] : memref<5xf32, #tpu.memory_space<smem>>
    %167 = vector.broadcast %166 : f32 to vector<18x18xf32>
    %c1_94 = arith.constant 1 : index
    %c1_95 = arith.constant 1 : index
    %c0_96 = arith.constant 0 : index
    %c0_97 = arith.constant 0 : index
    %168 = vector.load %arg3[%c1_94, %c1_95, %c0_96, %c0_97] : memref<2x5x18x18xf32, #tpu.memory_space<vmem>>, vector<1x1x18x18xf32>
    %169 = vector.shape_cast %168 : vector<1x1x18x18xf32> to vector<18x18xf32>
    %170 = vector.shape_cast %167 : vector<18x18xf32> to vector<1x1x18x18xf32>
    tpu.vector_store %arg3[%c1_94, %c1_95, %c0_96, %c0_97], %170 {strides = array<i32>} : memref<2x5x18x18xf32, #tpu.memory_space<vmem>>, vector<1x1x18x18xf32>,
    %171 = vector.extract_strided_slice %138 {offsets = [0, 0, 0], sizes = [1, 16, 16], strides = [1, 1, 1]} : vector<3x16x16xf32> to vector<1x16x16xf32>
    %172 = vector.shape_cast %171 : vector<1x16x16xf32> to vector<16x16xf32>
    %c1_98 = arith.constant 1 : index
    %c0_99 = arith.constant 0 : index
    %173 = memref.load %arg0[%c1_98, %c0_99] : memref<5x3xf32, #tpu.memory_space<smem>>
    %174 = vector.broadcast %173 : f32 to vector<16x16xf32>
    %175 = arith.mulf %172, %174 : vector<16x16xf32>
    %176 = vector.extract_strided_slice %138 {offsets = [1, 0, 0], sizes = [1, 16, 16], strides = [1, 1, 1]} : vector<3x16x16xf32> to vector<1x16x16xf32>
    %177 = vector.shape_cast %176 : vector<1x16x16xf32> to vector<16x16xf32>
    %c1_100 = arith.constant 1 : index
    %c1_101 = arith.constant 1 : index
    %178 = memref.load %arg0[%c1_100, %c1_101] : memref<5x3xf32, #tpu.memory_space<smem>>
    %179 = vector.broadcast %178 : f32 to vector<16x16xf32>
    %180 = arith.mulf %177, %179 : vector<16x16xf32>
    %181 = arith.addf %175, %180 : vector<16x16xf32>
    %182 = vector.extract_strided_slice %138 {offsets = [2, 0, 0], sizes = [1, 16, 16], strides = [1, 1, 1]} : vector<3x16x16xf32> to vector<1x16x16xf32>
    %183 = vector.shape_cast %182 : vector<1x16x16xf32> to vector<16x16xf32>
    %c1_102 = arith.constant 1 : index
    %c2_103 = arith.constant 2 : index
    %184 = memref.load %arg0[%c1_102, %c2_103] : memref<5x3xf32, #tpu.memory_space<smem>>
    %185 = vector.broadcast %184 : f32 to vector<16x16xf32>
    %186 = arith.mulf %183, %185 : vector<16x16xf32>
    %187 = arith.addf %181, %186 : vector<16x16xf32>
    %188 = vector.broadcast %166 : f32 to vector<16x16xf32>
    %189 = arith.addf %187, %188 : vector<16x16xf32>
    %c1_104 = arith.constant 1 : index
    %c1_105 = arith.constant 1 : index
    %c1_106 = arith.constant 1 : index
    %c1_107 = arith.constant 1 : index
    %190 = vector.load %arg3[%c1_104, %c1_105, %c1_106, %c1_107] : memref<2x5x18x18xf32, #tpu.memory_space<vmem>>, vector<1x1x16x16xf32>
    %191 = vector.shape_cast %190 : vector<1x1x16x16xf32> to vector<16x16xf32>
    %192 = vector.shape_cast %189 : vector<16x16xf32> to vector<1x1x16x16xf32>
    tpu.vector_store %arg3[%c1_104, %c1_105, %c1_106, %c1_107], %192 {strides = array<i32>} : memref<2x5x18x18xf32, #tpu.memory_space<vmem>>, vector<1x1x16x16xf32>,
    %c2_108 = arith.constant 2 : index
    %193 = memref.load %arg1[%c2_108] : memref<5xf32, #tpu.memory_space<smem>>
    %194 = vector.broadcast %193 : f32 to vector<18x18xf32>
    %c1_109 = arith.constant 1 : index
    %c2_110 = arith.constant 2 : index
    %c0_111 = arith.constant 0 : index
    %c0_112 = arith.constant 0 : index
    %195 = vector.load %arg3[%c1_109, %c2_110, %c0_111, %c0_112] : memref<2x5x18x18xf32, #tpu.memory_space<vmem>>, vector<1x1x18x18xf32>
    %196 = vector.shape_cast %195 : vector<1x1x18x18xf32> to vector<18x18xf32>
    %197 = vector.shape_cast %194 : vector<18x18xf32> to vector<1x1x18x18xf32>
    tpu.vector_store %arg3[%c1_109, %c2_110, %c0_111, %c0_112], %197 {strides = array<i32>} : memref<2x5x18x18xf32, #tpu.memory_space<vmem>>, vector<1x1x18x18xf32>,
    %198 = vector.extract_strided_slice %138 {offsets = [0, 0, 0], sizes = [1, 16, 16], strides = [1, 1, 1]} : vector<3x16x16xf32> to vector<1x16x16xf32>
    %199 = vector.shape_cast %198 : vector<1x16x16xf32> to vector<16x16xf32>
    %c2_113 = arith.constant 2 : index
    %c0_114 = arith.constant 0 : index
    %200 = memref.load %arg0[%c2_113, %c0_114] : memref<5x3xf32, #tpu.memory_space<smem>>
    %201 = vector.broadcast %200 : f32 to vector<16x16xf32>
    %202 = arith.mulf %199, %201 : vector<16x16xf32>
    %203 = vector.extract_strided_slice %138 {offsets = [1, 0, 0], sizes = [1, 16, 16], strides = [1, 1, 1]} : vector<3x16x16xf32> to vector<1x16x16xf32>
    %204 = vector.shape_cast %203 : vector<1x16x16xf32> to vector<16x16xf32>
    %c2_115 = arith.constant 2 : index
    %c1_116 = arith.constant 1 : index
    %205 = memref.load %arg0[%c2_115, %c1_116] : memref<5x3xf32, #tpu.memory_space<smem>>
    %206 = vector.broadcast %205 : f32 to vector<16x16xf32>
    %207 = arith.mulf %204, %206 : vector<16x16xf32>
    %208 = arith.addf %202, %207 : vector<16x16xf32>
    %209 = vector.extract_strided_slice %138 {offsets = [2, 0, 0], sizes = [1, 16, 16], strides = [1, 1, 1]} : vector<3x16x16xf32> to vector<1x16x16xf32>
    %210 = vector.shape_cast %209 : vector<1x16x16xf32> to vector<16x16xf32>
    %c2_117 = arith.constant 2 : index
    %c2_118 = arith.constant 2 : index
    %211 = memref.load %arg0[%c2_117, %c2_118] : memref<5x3xf32, #tpu.memory_space<smem>>
    %212 = vector.broadcast %211 : f32 to vector<16x16xf32>
    %213 = arith.mulf %210, %212 : vector<16x16xf32>
    %214 = arith.addf %208, %213 : vector<16x16xf32>
    %215 = vector.broadcast %193 : f32 to vector<16x16xf32>
    %216 = arith.addf %214, %215 : vector<16x16xf32>
    %c1_119 = arith.constant 1 : index
    %c2_120 = arith.constant 2 : index
    %c1_121 = arith.constant 1 : index
    %c1_122 = arith.constant 1 : index
    %217 = vector.load %arg3[%c1_119, %c2_120, %c1_121, %c1_122] : memref<2x5x18x18xf32, #tpu.memory_space<vmem>>, vector<1x1x16x16xf32>
    %218 = vector.shape_cast %217 : vector<1x1x16x16xf32> to vector<16x16xf32>
    %219 = vector.shape_cast %216 : vector<16x16xf32> to vector<1x1x16x16xf32>
    tpu.vector_store %arg3[%c1_119, %c2_120, %c1_121, %c1_122], %219 {strides = array<i32>} : memref<2x5x18x18xf32, #tpu.memory_space<vmem>>, vector<1x1x16x16xf32>,
    %c3_123 = arith.constant 3 : index
    %220 = memref.load %arg1[%c3_123] : memref<5xf32, #tpu.memory_space<smem>>
    %221 = vector.broadcast %220 : f32 to vector<18x18xf32>
    %c1_124 = arith.constant 1 : index
    %c3_125 = arith.constant 3 : index
    %c0_126 = arith.constant 0 : index
    %c0_127 = arith.constant 0 : index
    %222 = vector.load %arg3[%c1_124, %c3_125, %c0_126, %c0_127] : memref<2x5x18x18xf32, #tpu.memory_space<vmem>>, vector<1x1x18x18xf32>
    %223 = vector.shape_cast %222 : vector<1x1x18x18xf32> to vector<18x18xf32>
    %224 = vector.shape_cast %221 : vector<18x18xf32> to vector<1x1x18x18xf32>
    tpu.vector_store %arg3[%c1_124, %c3_125, %c0_126, %c0_127], %224 {strides = array<i32>} : memref<2x5x18x18xf32, #tpu.memory_space<vmem>>, vector<1x1x18x18xf32>,
    %225 = vector.extract_strided_slice %138 {offsets = [0, 0, 0], sizes = [1, 16, 16], strides = [1, 1, 1]} : vector<3x16x16xf32> to vector<1x16x16xf32>
    %226 = vector.shape_cast %225 : vector<1x16x16xf32> to vector<16x16xf32>
    %c3_128 = arith.constant 3 : index
    %c0_129 = arith.constant 0 : index
    %227 = memref.load %arg0[%c3_128, %c0_129] : memref<5x3xf32, #tpu.memory_space<smem>>
    %228 = vector.broadcast %227 : f32 to vector<16x16xf32>
    %229 = arith.mulf %226, %228 : vector<16x16xf32>
    %230 = vector.extract_strided_slice %138 {offsets = [1, 0, 0], sizes = [1, 16, 16], strides = [1, 1, 1]} : vector<3x16x16xf32> to vector<1x16x16xf32>
    %231 = vector.shape_cast %230 : vector<1x16x16xf32> to vector<16x16xf32>
    %c3_130 = arith.constant 3 : index
    %c1_131 = arith.constant 1 : index
    %232 = memref.load %arg0[%c3_130, %c1_131] : memref<5x3xf32, #tpu.memory_space<smem>>
    %233 = vector.broadcast %232 : f32 to vector<16x16xf32>
    %234 = arith.mulf %231, %233 : vector<16x16xf32>
    %235 = arith.addf %229, %234 : vector<16x16xf32>
    %236 = vector.extract_strided_slice %138 {offsets = [2, 0, 0], sizes = [1, 16, 16], strides = [1, 1, 1]} : vector<3x16x16xf32> to vector<1x16x16xf32>
    %237 = vector.shape_cast %236 : vector<1x16x16xf32> to vector<16x16xf32>
    %c3_132 = arith.constant 3 : index
    %c2_133 = arith.constant 2 : index
    %238 = memref.load %arg0[%c3_132, %c2_133] : memref<5x3xf32, #tpu.memory_space<smem>>
    %239 = vector.broadcast %238 : f32 to vector<16x16xf32>
    %240 = arith.mulf %237, %239 : vector<16x16xf32>
    %241 = arith.addf %235, %240 : vector<16x16xf32>
    %242 = vector.broadcast %220 : f32 to vector<16x16xf32>
    %243 = arith.addf %241, %242 : vector<16x16xf32>
    %c1_134 = arith.constant 1 : index
    %c3_135 = arith.constant 3 : index
    %c1_136 = arith.constant 1 : index
    %c1_137 = arith.constant 1 : index
    %244 = vector.load %arg3[%c1_134, %c3_135, %c1_136, %c1_137] : memref<2x5x18x18xf32, #tpu.memory_space<vmem>>, vector<1x1x16x16xf32>
    %245 = vector.shape_cast %244 : vector<1x1x16x16xf32> to vector<16x16xf32>
    %246 = vector.shape_cast %243 : vector<16x16xf32> to vector<1x1x16x16xf32>
    tpu.vector_store %arg3[%c1_134, %c3_135, %c1_136, %c1_137], %246 {strides = array<i32>} : memref<2x5x18x18xf32, #tpu.memory_space<vmem>>, vector<1x1x16x16xf32>,
    %c4_138 = arith.constant 4 : index
    %247 = memref.load %arg1[%c4_138] : memref<5xf32, #tpu.memory_space<smem>>
    %248 = vector.broadcast %247 : f32 to vector<18x18xf32>
    %c1_139 = arith.constant 1 : index
    %c4_140 = arith.constant 4 : index
    %c0_141 = arith.constant 0 : index
    %c0_142 = arith.constant 0 : index
    %249 = vector.load %arg3[%c1_139, %c4_140, %c0_141, %c0_142] : memref<2x5x18x18xf32, #tpu.memory_space<vmem>>, vector<1x1x18x18xf32>
    %250 = vector.shape_cast %249 : vector<1x1x18x18xf32> to vector<18x18xf32>
    %251 = vector.shape_cast %248 : vector<18x18xf32> to vector<1x1x18x18xf32>
    tpu.vector_store %arg3[%c1_139, %c4_140, %c0_141, %c0_142], %251 {strides = array<i32>} : memref<2x5x18x18xf32, #tpu.memory_space<vmem>>, vector<1x1x18x18xf32>,
    %252 = vector.extract_strided_slice %138 {offsets = [0, 0, 0], sizes = [1, 16, 16], strides = [1, 1, 1]} : vector<3x16x16xf32> to vector<1x16x16xf32>
    %253 = vector.shape_cast %252 : vector<1x16x16xf32> to vector<16x16xf32>
    %c4_143 = arith.constant 4 : index
    %c0_144 = arith.constant 0 : index
    %254 = memref.load %arg0[%c4_143, %c0_144] : memref<5x3xf32, #tpu.memory_space<smem>>
    %255 = vector.broadcast %254 : f32 to vector<16x16xf32>
    %256 = arith.mulf %253, %255 : vector<16x16xf32>
    %257 = vector.extract_strided_slice %138 {offsets = [1, 0, 0], sizes = [1, 16, 16], strides = [1, 1, 1]} : vector<3x16x16xf32> to vector<1x16x16xf32>
    %258 = vector.shape_cast %257 : vector<1x16x16xf32> to vector<16x16xf32>
    %c4_145 = arith.constant 4 : index
    %c1_146 = arith.constant 1 : index
    %259 = memref.load %arg0[%c4_145, %c1_146] : memref<5x3xf32, #tpu.memory_space<smem>>
    %260 = vector.broadcast %259 : f32 to vector<16x16xf32>
    %261 = arith.mulf %258, %260 : vector<16x16xf32>
    %262 = arith.addf %256, %261 : vector<16x16xf32>
    %263 = vector.extract_strided_slice %138 {offsets = [2, 0, 0], sizes = [1, 16, 16], strides = [1, 1, 1]} : vector<3x16x16xf32> to vector<1x16x16xf32>
    %264 = vector.shape_cast %263 : vector<1x16x16xf32> to vector<16x16xf32>
    %c4_147 = arith.constant 4 : index
    %c2_148 = arith.constant 2 : index
    %265 = memref.load %arg0[%c4_147, %c2_148] : memref<5x3xf32, #tpu.memory_space<smem>>
    %266 = vector.broadcast %265 : f32 to vector<16x16xf32>
    %267 = arith.mulf %264, %266 : vector<16x16xf32>
    %268 = arith.addf %262, %267 : vector<16x16xf32>
    %269 = vector.broadcast %247 : f32 to vector<16x16xf32>
    %270 = arith.addf %268, %269 : vector<16x16xf32>
    %c1_149 = arith.constant 1 : index
    %c4_150 = arith.constant 4 : index
    %c1_151 = arith.constant 1 : index
    %c1_152 = arith.constant 1 : index
    %271 = vector.load %arg3[%c1_149, %c4_150, %c1_151, %c1_152] : memref<2x5x18x18xf32, #tpu.memory_space<vmem>>, vector<1x1x16x16xf32>
    %272 = vector.shape_cast %271 : vector<1x1x16x16xf32> to vector<16x16xf32>
    %273 = vector.shape_cast %270 : vector<16x16xf32> to vector<1x1x16x16xf32>
    tpu.vector_store %arg3[%c1_149, %c4_150, %c1_151, %c1_152], %273 {strides = array<i32>} : memref<2x5x18x18xf32, #tpu.memory_space<vmem>>, vector<1x1x16x16xf32>,
    return
  }
}

</mosaic_0001>

<bundles_post_ra>
// kernel: model_forward.1
= control target key start
LH: loop header
LB: loop body
LE: loop exit
PB: predicated region body
PF: predicated region fallthrough
CT: control target
= control target key end

     0   :  { %8 = vsyncpa [#allocation4], 0  ;;  %s1100_s0 = inlined_call_operand.vmem [shape: f32[5,3], index: 0, kind: input, shape index: {}]   ;;  %s1101_s1 = inlined_call_operand.vmem [shape: f32[5], index: 1, kind: input, shape index: {}]   ;;  %s1102_s2 = inlined_call_operand.hbm [shape: f32[2,3,16,16], index: 2, kind: input, shape index: {}]   ;;  %s1103_s3 = inlined_call_operand.vmem [shape: f32[2,5,18,18], index: 3, kind: output, shape index: {}]  }
   0x1   :  { %9 = vsyncpa [#allocation6], 0  ;;  %s17_s14 = sshll.u32 %s1100_s0, 4  ;;  %s18_s14 = int_to_ptr.vmem [resolvable:$true] %s17_s14 }
   0x2   :  { %10 = vsyncpa [#allocation3], 0  ;;  %s27_s17 = sshll.u32 %s1101_s1, 4  ;;  %s502_s18 = scalar_lea.vmem %s18_s14, 128  ;;  %s28_s17 = int_to_ptr.vmem [resolvable:$true] %s27_s17 }
   0x3   :  { %p503_p0 = scmp.ne.s32.totalorder %s18_s14, %s502_s18  ;;  %p507_p1 = scmp.lt.s32.totalorder %s18_s14, %s18_s14 }
   0x4   :  { %p508_p2 = scmp.lt.s32.totalorder %s502_s18, %s502_s18 }
   0x6   :  { %p509_p3 = por %p508_p2, %p507_p1 }
   0x8   :  { %p510_p4 = pnand %p509_p3, %p503_p0 }
   0xa   :  { %513 = shalt.err (!%p510_p4)
}
   0xb   :  { %s554_s19 = smov [#allocation2]   ;;  %s514_s20 = scalar_lea.vmem %s28_s17, 16 }
   0xc   :  { %20 = dma.vmem_to_smem %s18_s14, 128, %s554_s19, [#allocation4]  }
   0xd   :  { %p515_p5 = scmp.ne.s32.totalorder %s28_s17, %s514_s20  ;;  %p519_p6 = scmp.lt.s32.totalorder %s28_s17, %s28_s17 }
   0xe   :  { %p520_p7 = scmp.lt.s32.totalorder %s514_s20, %s514_s20 }
  0x10   :  { %p521_p8 = por %p520_p7, %p519_p6 }
  0x12   :  { %p522_p9 = pnand %p521_p8, %p515_p5 }
  0x14   :  { %525 = shalt.err (!%p522_p9)
}
  0x15   :  { %s555_s0 = smov [#allocation5]   ;;  %s556_s1 = smov [#allocation7]  }
  0x16   :  { %30 = dma.vmem_to_smem %s28_s17, 16, %s555_s0, [#allocation6]  }
  0x17   :  { %s36_s21 = sshll.u32 %s556_s1, 4  ;;  %s526_s24 = scalar_lea.hbm %s1102_s2, 1536  ;;  %s37_s21 = int_to_ptr.vmem [resolvable:$true] %s36_s21 }
  0x18   :  { %p527_p10 = scmp.ne.s32.totalorder %s1102_s2, %s526_s24  ;;  %p530_p11 = scmp.lt.u32.totalorder %s526_s24, %s1102_s2 }
  0x1a   :  { %p532_p12 = pnand %p530_p11, %p527_p10 }
  0x1c   :  { %535 = shalt.err (!%p532_p12)
}
  0x1d   :  { %s536_s29 = scalar_lea.vmem %s37_s21, 1536  ;;  %p541_p0 = scmp.lt.s32.totalorder %s37_s21, %s37_s21 }
  0x1e   :  { %p537_p13 = scmp.ne.s32.totalorder %s37_s21, %s536_s29  ;;  %p542_p1 = scmp.lt.s32.totalorder %s536_s29, %s536_s29 }
  0x20   :  { %p543_p2 = por %p542_p1, %p541_p0 }
  0x22   :  { %p544_p3 = pnand %p543_p2, %p537_p13 }
  0x24   :  { %547 = shalt.err (!%p544_p3)
}
  0x25   :  { %s557_s30 = smov 128   ;;  %s558_s4 = smov 8  }
  0x26   :  { %42 = dma.hbm_to_vmem [thread:$0]  %s1102_s2, 1536, %s37_s21, [#allocation3], %s557_s30, %s557_s30, %s558_s4  }
  0x27   :  { %548 = dma.done.wait [#allocation4], 128  }
  0x28   :  { %549 = vsyncadd [#allocation4], 4294967168 }
  0x29   :  { %550 = dma.done.wait [#allocation6], 16  }
  0x2a   :  { %551 = vsyncadd [#allocation6], 4294967280 }
  0x2b   :  { %552 = dma.done.wait [#allocation3], 1536  }
  0x2c   :  { %553 = vsyncadd [#allocation3], 4294965760 }
  0x2d   :  { %52 = sfence }
  0x2e   :  { %s417_s7 = sld [smem:[#allocation5 + $0x1]]  ;;  %s421_s8 = sld [smem:[#allocation2 + $0x80]]  ;;  %v602_v0 = vld [vmem:[#allocation7] sm:$0xff]  ;;  %vm61_vm0 = vcmask 146432   ;;  %v608_v1 = vld [vmem:[#allocation7 + $0x8] sm:$0xff]  ;;  %v610_v2 = vld [vmem:[#allocation7 + $0x10] sm:$0xff] }
  0x2f   :  { %s422_s9 = sld [smem:[#allocation2 + $0x81]]  ;;  %s423_s10 = sld [smem:[#allocation2 + $0x82]]  ;;  %v616_v3 = vld [vmem:[#allocation7 + $0x18] sm:$0xff]  ;;  %v618_v4 = vld [vmem:[#allocation7 + $0x20] sm:$0xff]  ;;  %v620_v5 = vld [vmem:[#allocation7 + $0x28] sm:$0xff]  ;;  %vm64_vm1 = vcmask 140288  }
  0x30   :  { %s598_s11 = sld [smem:[#allocation5]]  ;;  %s604_s13 = sld [smem:[#allocation2 + $0x1]]  ;;  %vm92_vm2 = vcmask 138248  }
  0x31   :  { %s600_s12 = sld [smem:[#allocation2]]  ;;  %s606_s2 = sld [smem:[#allocation2 + $0x2]] }
  0x32   :  { %s612_s14 = sld [smem:[#allocation5 + $0x2]]  ;;  %s614_s15 = sld [smem:[#allocation2 + $0x100]] }
  0x33   :  { %s624_s16 = sld [smem:[#allocation2 + $0x101]]  ;;  %s628_s17 = sld [smem:[#allocation2 + $0x102]] }
  0x34   :  { %v622_v6 = vstv %s417_s7  ;;  %v626_v7 = vstv %s421_s8  ;;  %s676_s28 = sld [smem:[#allocation5 + $0x3]]  ;;  %s690_s29 = sld [smem:[#allocation2 + $0x180]] }
  0x35   :  { %418 = vst.msk [vmem:[%s1103_s3 + $0x18] sm:$0xff] %vm61_vm0, %v622_v6  ;;  %419 = vst.msk [vmem:[%s1103_s3 + $0x20] sm:$0xff] %vm61_vm0, %v622_v6  ;;  %v103_v8 = vmul.f32 %v626_v7, %v602_v0  ;;  %v104_v9 = vmul.f32 %v626_v7, %v608_v1  ;;  %v664_v10 = vstv %s422_s9  ;;  %v666_v11 = vstv %s423_s10  ;;  %s692_s30 = sld [smem:[#allocation2 + $0x181]]  ;;  %s736_s19 = sld [smem:[#allocation2 + $0x182]] }
  0x36   :  { %461 = vst.msk [vmem:[%s1103_s3 + $0x90] sm:$0xff] %vm61_vm0, %v622_v6  ;;  %462 = vst.msk [vmem:[%s1103_s3 + $0x98] sm:$0xff] %vm61_vm0, %v622_v6  ;;  %v107_v12 = vmul.f32 %v664_v10, %v610_v2  ;;  %v108_v13 = vmul.f32 %v664_v10, %v616_v3  ;;  %v113_v14 = vmul.f32 %v666_v11, %v618_v4  ;;  %v679_v16 = vstv %s598_s11  ;;  %s738_s20 = sld [smem:[#allocation5 + $0x4]]  ;;  %s751_s0 = sld [smem:[#allocation2 + $0x200]] }
  0x37   :  { %420 = vst.msk [vmem:[%s1103_s3 + $0x28] sm:$0x3] %vm64_vm1, %v622_v6  ;;  %463 = vst.msk [vmem:[%s1103_s3 + $0xa0] sm:$0x3] %vm64_vm1, %v622_v6  ;;  %v114_v15 = vmul.f32 %v666_v11, %v620_v5  ;;  %v682_v17 = vstv %s600_s12  ;;  %v685_v18 = vstv %s604_s13  ;;  %s753_s1 = sld [smem:[#allocation2 + $0x201]]  ;;  %s796_s6 = sld [smem:[#allocation2 + $0x202]] }
  0x38   :  { %v688_v19 = vstv %s606_s2  ;;  %v109_v20 = vadd.f32 %v107_v12, %v103_v8  ;;  %v68_v21 = vmul.f32 %v682_v17, %v602_v0  ;;  %v69_v22 = vmul.f32 %v682_v17, %v608_v1  ;;  %62 = vst.msk [vmem:[%s1103_s3] sm:$0xff] %vm61_vm0, %v679_v16  ;;  %63 = vst.msk [vmem:[%s1103_s3 + $0x8] sm:$0xff] %vm61_vm0, %v679_v16  ;;  %s559_s7 = smov 1  }
  0x39   :  { %v72_v23 = vmul.f32 %v685_v18, %v610_v2  ;;  %453 = vst.msk [vmem:[%s1103_s3 + $0x78] sm:$0xff] %vm61_vm0, %v679_v16  ;;  %454 = vst.msk [vmem:[%s1103_s3 + $0x80] sm:$0xff] %vm61_vm0, %v679_v16  ;;  %v73_v24 = vmul.f32 %v685_v18, %v616_v3  ;;  %v78_v25 = vmul.f32 %v688_v19, %v618_v4  ;;  %v741_v30 = vstv %s612_s14 }
  0x3a   :  { %65 = vst.msk [vmem:[%s1103_s3 + $0x10] sm:$0x3] %vm64_vm1, %v679_v16  ;;  %455 = vst.msk [vmem:[%s1103_s3 + $0x88] sm:$0x3] %vm64_vm1, %v679_v16  ;;  %v79_v26 = vmul.f32 %v688_v19, %v620_v5  ;;  %v110_v27 = vadd.f32 %v108_v13, %v104_v9  ;;  %v115_v28 = vadd.f32 %v113_v14, %v109_v20  ;;  %v744_v31 = vstv %s614_s15 }
  0x3b   :  { %v74_v29 = vadd.f32 %v72_v23, %v68_v21  ;;  %v75_v33 = vadd.f32 %v73_v24, %v69_v22  ;;  %v138_v34 = vmul.f32 %v744_v31, %v608_v1  ;;  %v749_v35 = vstv %s624_s16  ;;  %427 = vst.msk [vmem:[%s1103_s3 + $0x30] sm:$0xff] %vm61_vm0, %v741_v30  ;;  %428 = vst.msk [vmem:[%s1103_s3 + $0x38] sm:$0xff] %vm61_vm0, %v741_v30  ;;  %v907_v22 = vld [vmem:[#allocation7 + $0x38] sm:$0xff]  ;;  %v909_v23 = vld [vmem:[#allocation7 + $0x48] sm:$0xff] }
  0x3c   :  { %v116_v32 = vadd.f32 %v114_v15, %v110_v27  ;;  %470 = vst.msk [vmem:[%s1103_s3 + $0xa8] sm:$0xff] %vm61_vm0, %v741_v30  ;;  %471 = vst.msk [vmem:[%s1103_s3 + $0xb0] sm:$0xff] %vm61_vm0, %v741_v30  ;;  %v117_v36 = vadd.f32 %v115_v28, %v622_v6  ;;  %v142_v38 = vmul.f32 %v749_v35, %v616_v3  ;;  %v789_v39 = vstv %s628_s17  ;;  %v918_v28 = vld [vmem:[#allocation7 + $0x58] sm:$0xff] }
  0x3d   :  { %429 = vst.msk [vmem:[%s1103_s3 + $0x40] sm:$0x3] %vm64_vm1, %v741_v30  ;;  %472 = vst.msk [vmem:[%s1103_s3 + $0xb8] sm:$0x3] %vm64_vm1, %v741_v30  ;;  %v80_v37 = vadd.f32 %v78_v25, %v74_v29  ;;  %v81_v41 = vadd.f32 %v79_v26, %v75_v33  ;;  %v148_v42 = vmul.f32 %v789_v39, %v620_v5  ;;  %v806_v49 = vstv %s676_s28  ;;  %v920_v29 = vld [vmem:[#allocation7 + $0x30] sm:$0xff] }
  0x3e   :  { %v118_v40 = vadd.f32 %v116_v32, %v622_v6  ;;  %v137_v43 = vmul.f32 %v744_v31, %v602_v0  ;;  %121 = vrot.lane.b32.xlu1 %v117_v36, %s559_s7  ;;  %v144_v45 = vadd.f32 %v142_v38, %v138_v34  ;;  %v141_v46 = vmul.f32 %v749_v35, %v610_v2  ;;  %v930_v34 = vld [vmem:[#allocation7 + $0x50] sm:$0xff] }
  0x3f   :  { %v82_v44 = vadd.f32 %v80_v37, %v679_v16  ;;  %v147_v47 = vmul.f32 %v789_v39, %v618_v4  ;;  %v83_v48 = vadd.f32 %v81_v41, %v679_v16  ;;  %v809_v50 = vstv %s690_s29  ;;  %436 = vst.msk [vmem:[%s1103_s3 + $0x48] sm:$0xff] %vm61_vm0, %v806_v49  ;;  %437 = vst.msk [vmem:[%s1103_s3 + $0x50] sm:$0xff] %vm61_vm0, %v806_v49 }
  0x40   :  { %v812_v51 = vstv %s692_s30  ;;  %v150_v52 = vadd.f32 %v148_v42, %v144_v45  ;;  %v143_v53 = vadd.f32 %v141_v46, %v137_v43  ;;  %v172_v54 = vmul.f32 %v809_v50, %v608_v1  ;;  %479 = vst.msk [vmem:[%s1103_s3 + $0xc0] sm:$0xff] %vm61_vm0, %v806_v49  ;;  %480 = vst.msk [vmem:[%s1103_s3 + $0xc8] sm:$0xff] %vm61_vm0, %v806_v49 }
  0x41   :  { %86 = vrot.lane.b32.xlu0 %v82_v44, %s559_s7  ;;  %v176_v55 = vmul.f32 %v812_v51, %v616_v3  ;;  %438 = vst.msk [vmem:[%s1103_s3 + $0x58] sm:$0x3] %vm64_vm1, %v806_v49  ;;  %481 = vst.msk [vmem:[%s1103_s3 + $0xd0] sm:$0x3] %vm64_vm1, %v806_v49  ;;  %v850_v56 = vstv %s736_s19  ;;  %v171_v57 = vmul.f32 %v809_v50, %v602_v0 }
  0x42   :  { %v175_v58 = vmul.f32 %v812_v51, %v610_v2  ;;  %v857_v59 = vstv %s738_s20  ;;  %123 = vrot.lane.b32.xlu1 %v118_v40, %s559_s7  ;;  %v152_v60 = vadd.f32 %v150_v52, %v741_v30  ;;  %v149_v61 = vadd.f32 %v147_v47, %v143_v53 }
  0x43   :  { %v178_v62 = vadd.f32 %v176_v55, %v172_v54  ;;  %v182_v63 = vmul.f32 %v850_v56, %v620_v5  ;;  %445 = vst.msk [vmem:[%s1103_s3 + $0x60] sm:$0xff] %vm61_vm0, %v857_v59  ;;  %446 = vst.msk [vmem:[%s1103_s3 + $0x68] sm:$0xff] %vm61_vm0, %v857_v59  ;;  %v181_v9 = vmul.f32 %v850_v56, %v618_v4  ;;  %v896_v12 = vstv %s751_s0 }
  0x44   :  { %488 = vst.msk [vmem:[%s1103_s3 + $0xd8] sm:$0xff] %vm61_vm0, %v857_v59  ;;  %489 = vst.msk [vmem:[%s1103_s3 + $0xe0] sm:$0xff] %vm61_vm0, %v857_v59  ;;  %v177_v8 = vadd.f32 %v175_v58, %v171_v57  ;;  %v899_v13 = vstv %s753_s1  ;;  %v151_v14 = vadd.f32 %v149_v61, %v741_v30  ;;  %v206_v20 = vmul.f32 %v896_v12, %v608_v1  ;;  %v922_v1 = vld [vmem:[#allocation7 + $0x40] sm:$0xff] }
  0x45   :  { %447 = vst.msk [vmem:[%s1103_s3 + $0x70] sm:$0x3] %vm64_vm1, %v857_v59  ;;  %490 = vst.msk [vmem:[%s1103_s3 + $0xe8] sm:$0x3] %vm64_vm1, %v857_v59  ;;  %88 = vrot.lane.b32.xlu0 %v83_v48, %s559_s7  ;;  %v184_v15 = vadd.f32 %v182_v63, %v178_v62  ;;  %v210_v21 = vmul.f32 %v899_v13, %v616_v3  ;;  %v912_v25 = vstv %s796_s6 }
  0x46   :  { %v183_v24 = vadd.f32 %v181_v9, %v177_v8  ;;  %v205_v26 = vmul.f32 %v896_v12, %v602_v0  ;;  %v209_v27 = vmul.f32 %v899_v13, %v610_v2  ;;  %157 = vrot.lane.b32.xlu1 %v152_v60, %s559_s7  ;;  %v216_v33 = vmul.f32 %v912_v25, %v620_v5 }
  0x47   :  { %v186_v3 = vadd.f32 %v184_v15, %v806_v49  ;;  %v212_v32 = vadd.f32 %v210_v21, %v206_v20  ;;  %v215_v0 = vmul.f32 %v912_v25, %v618_v4  ;;  %v247_v37 = vmul.f32 %v907_v22, %v682_v17 }
  0x48   :  { %v185_v2 = vadd.f32 %v183_v24, %v806_v49  ;;  %v211_v36 = vadd.f32 %v209_v27, %v205_v26  ;;  %v251_v38 = vmul.f32 %v909_v23, %v685_v18  ;;  %v257_v5 = vmul.f32 %v918_v28, %v688_v19 }
  0x49   :  { %155 = vrot.lane.b32.xlu0 %v151_v14, %s559_s7  ;;  %v218_v40 = vadd.f32 %v216_v33, %v212_v32  ;;  %v246_v4 = vmul.f32 %v920_v29, %v682_v17  ;;  %v250_v41 = vmul.f32 %v922_v1, %v685_v18  ;;  %v256_v44 = vmul.f32 %v930_v34, %v688_v19 }
  0x4a   :  { %v217_v42 = vadd.f32 %v215_v0, %v211_v36  ;;  %v253_v43 = vadd.f32 %v251_v38, %v247_v37  ;;  %v281_v45 = vmul.f32 %v907_v22, %v626_v7  ;;  %191 = vrot.lane.b32.xlu1 %v186_v3, %s559_s7  ;;  %v285_v48 = vmul.f32 %v909_v23, %v664_v10 }
  0x4b   :  { %v220_v46 = vadd.f32 %v218_v40, %v857_v59  ;;  %v252_v47 = vadd.f32 %v250_v41, %v246_v4  ;;  %v291_v17 = vmul.f32 %v918_v28, %v666_v11  ;;  %v280_v19 = vmul.f32 %v920_v29, %v626_v7 }
  0x4c   :  { %v219_v18 = vadd.f32 %v217_v42, %v857_v59  ;;  %v259_v52 = vadd.f32 %v257_v5, %v253_v43  ;;  %v284_v53 = vmul.f32 %v922_v1, %v664_v10  ;;  %v287_v55 = vadd.f32 %v285_v48, %v281_v45 }
  0x4d   :  { %189 = vrot.lane.b32.xlu0 %v185_v2, %s559_s7  ;;  %v258_v54 = vadd.f32 %v256_v44, %v252_v47  ;;  %v290_v57 = vmul.f32 %v930_v34, %v666_v11  ;;  %v315_v58 = vmul.f32 %v907_v22, %v744_v31  ;;  %v319_v62 = vmul.f32 %v909_v23, %v749_v35 }
  0x4e   :  { %v261_v60 = vadd.f32 %v259_v52, %v679_v16  ;;  %v286_v61 = vadd.f32 %v284_v53, %v280_v19  ;;  %225 = vrot.lane.b32.xlu1 %v220_v46, %s559_s7  ;;  %v293_v7 = vadd.f32 %v291_v17, %v287_v55  ;;  %v325_v10 = vmul.f32 %v918_v28, %v789_v39 }
  0x4f   :  { %v314_v63 = vmul.f32 %v920_v29, %v744_v31  ;;  %v318_v11 = vmul.f32 %v922_v1, %v749_v35  ;;  %v321_v9 = vadd.f32 %v319_v62, %v315_v58  ;;  %v324_v14 = vmul.f32 %v930_v34, %v789_v39 }
  0x50   :  { %v292_v8 = vadd.f32 %v290_v57, %v286_v61  ;;  %v349_v15 = vmul.f32 %v907_v22, %v809_v50  ;;  %v260_v20 = vadd.f32 %v258_v54, %v679_v16  ;;  %v353_v24 = vmul.f32 %v909_v23, %v812_v51 }
  0x51   :  { %223 = vrot.lane.b32.xlu0 %v219_v18, %s559_s7  ;;  %v320_v21 = vadd.f32 %v318_v11, %v314_v63  ;;  %v295_v31 = vadd.f32 %v293_v7, %v622_v6  ;;  %v348_v35 = vmul.f32 %v920_v29, %v809_v50  ;;  %v352_v26 = vmul.f32 %v922_v1, %v812_v51 }
  0x52   :  { %266 = vrot.lane.b32.xlu1 %v261_v60, %s559_s7  ;;  %v327_v39 = vadd.f32 %v325_v10, %v321_v9  ;;  %v355_v27 = vadd.f32 %v353_v24, %v349_v15  ;;  %v359_v3 = vmul.f32 %v918_v28, %v850_v56  ;;  %v383_v16 = vmul.f32 %v907_v22, %v896_v12 }
  0x53   :  { %v294_v32 = vadd.f32 %v292_v8, %v622_v6  ;;  %v326_v33 = vadd.f32 %v324_v14, %v320_v21  ;;  %v387_v0 = vmul.f32 %v909_v23, %v899_v13  ;;  %v354_v50 = vadd.f32 %v352_v26, %v348_v35 }
  0x54   :  { %v358_v51 = vmul.f32 %v930_v34, %v850_v56  ;;  %v382_v2 = vmul.f32 %v920_v29, %v896_v12  ;;  %v386_v36 = vmul.f32 %v922_v1, %v899_v13  ;;  %v329_v6 = vadd.f32 %v327_v39, %v741_v30 }
  0x55   :  { %264 = vrot.lane.b32.xlu0 %v260_v20, %s559_s7  ;;  %v361_v22 = vadd.f32 %v359_v3, %v355_v27  ;;  %v389_v37 = vadd.f32 %v387_v0, %v383_v16  ;;  %v393_v23 = vmul.f32 %v918_v28, %v912_v25  ;;  %v328_v38 = vadd.f32 %v326_v33, %v741_v30 }
  0x56   :  { %300 = vrot.lane.b32.xlu1 %v295_v31, %s559_s7  ;;  %v360_v56 = vadd.f32 %v358_v51, %v354_v50  ;;  %v388_v40 = vadd.f32 %v386_v36, %v382_v2  ;;  %v392_v12 = vmul.f32 %v930_v34, %v912_v25 }
  0x57   :  { %v363_v13 = vadd.f32 %v361_v22, %v806_v49  ;;  %v395_v29 = vadd.f32 %v393_v23, %v389_v37 }
  0x58   :  { %v362_v1 = vadd.f32 %v360_v56, %v806_v49  ;;  %v394_v5 = vadd.f32 %v392_v12, %v388_v40 }
  0x59   :  { %298 = vrot.lane.b32.xlu0 %v294_v32, %s559_s7  ;;  %v397_v28 = vadd.f32 %v395_v29, %v857_v59 }
  0x5a   :  { %334 = vrot.lane.b32.xlu1 %v329_v6, %s559_s7  ;;  %v396_v30 = vadd.f32 %v394_v5, %v857_v59 }
  0x5d   :  { %332 = vrot.lane.b32.xlu0 %v328_v38, %s559_s7 }
  0x5e   :  { %368 = vrot.lane.b32.xlu1 %v363_v13, %s559_s7 }
  0x61   :  { %366 = vrot.lane.b32.xlu0 %v362_v1, %s559_s7 }
  0x62   :  { %402 = vrot.lane.b32.xlu1 %v397_v28, %s559_s7 }
  0x65   :  { %400 = vrot.lane.b32.xlu0 %v396_v30, %s559_s7 }
  0xb0   :  { %v122_v25 = vpop.permute.xlu1 %121 }
  0xb1   :  { %424 = vst.msk [vmem:[%s1103_s3 + $0x19] sm:$0xff] %vm92_vm2, %v122_v25 }
  0xb3   :  { %v87_v49 = vpop.permute.xlu0 %86 }
  0xb4   :  { %93 = vst.msk [vmem:[%s1103_s3 + $0x1] sm:$0xff] %vm92_vm2, %v87_v49  ;;  %v124_v34 = vpop.permute.xlu1 %123 }
  0xb5   :  { %425 = vst.msk [vmem:[%s1103_s3 + $0x21] sm:$0xff] %vm92_vm2, %v124_v34 }
  0xb7   :  { %v89_v59 = vpop.permute.xlu0 %88 }
  0xb8   :  { %94 = vst.msk [vmem:[%s1103_s3 + $0x9] sm:$0xff] %vm92_vm2, %v89_v59  ;;  %v158_v4 = vpop.permute.xlu1 %157 }
  0xb9   :  { %434 = vst.msk [vmem:[%s1103_s3 + $0x39] sm:$0xff] %vm92_vm2, %v158_v4 }
  0xbb   :  { %v156_v41 = vpop.permute.xlu0 %155 }
  0xbc   :  { %433 = vst.msk [vmem:[%s1103_s3 + $0x31] sm:$0xff] %vm92_vm2, %v156_v41  ;;  %v192_v42 = vpop.permute.xlu1 %191 }
  0xbd   :  { %443 = vst.msk [vmem:[%s1103_s3 + $0x51] sm:$0xff] %vm92_vm2, %v192_v42 }
  0xbf   :  { %v190_v43 = vpop.permute.xlu0 %189 }
  0xc0   :  { %442 = vst.msk [vmem:[%s1103_s3 + $0x49] sm:$0xff] %vm92_vm2, %v190_v43  ;;  %v226_v44 = vpop.permute.xlu1 %225 }
  0xc1   :  { %452 = vst.msk [vmem:[%s1103_s3 + $0x69] sm:$0xff] %vm92_vm2, %v226_v44 }
  0xc3   :  { %v224_v45 = vpop.permute.xlu0 %223 }
  0xc4   :  { %451 = vst.msk [vmem:[%s1103_s3 + $0x61] sm:$0xff] %vm92_vm2, %v224_v45  ;;  %v267_v46 = vpop.permute.xlu1 %266 }
  0xc5   :  { %459 = vst.msk [vmem:[%s1103_s3 + $0x81] sm:$0xff] %vm92_vm2, %v267_v46 }
  0xc7   :  { %v265_v47 = vpop.permute.xlu0 %264 }
  0xc8   :  { %458 = vst.msk [vmem:[%s1103_s3 + $0x79] sm:$0xff] %vm92_vm2, %v265_v47  ;;  %v301_v48 = vpop.permute.xlu1 %300 }
  0xc9   :  { %468 = vst.msk [vmem:[%s1103_s3 + $0x99] sm:$0xff] %vm92_vm2, %v301_v48 }
  0xcb   :  { %v299_v17 = vpop.permute.xlu0 %298 }
  0xcc   :  { %467 = vst.msk [vmem:[%s1103_s3 + $0x91] sm:$0xff] %vm92_vm2, %v299_v17  ;;  %v335_v18 = vpop.permute.xlu1 %334 }
  0xcd   :  { %477 = vst.msk [vmem:[%s1103_s3 + $0xb1] sm:$0xff] %vm92_vm2, %v335_v18 }
  0xcf   :  { %v333_v52 = vpop.permute.xlu0 %332 }
  0xd0   :  { %476 = vst.msk [vmem:[%s1103_s3 + $0xa9] sm:$0xff] %vm92_vm2, %v333_v52  ;;  %v369_v19 = vpop.permute.xlu1 %368 }
  0xd1   :  { %486 = vst.msk [vmem:[%s1103_s3 + $0xc9] sm:$0xff] %vm92_vm2, %v369_v19 }
  0xd3   :  { %v367_v53 = vpop.permute.xlu0 %366 }
  0xd4   :  { %485 = vst.msk [vmem:[%s1103_s3 + $0xc1] sm:$0xff] %vm92_vm2, %v367_v53  ;;  %v403_v54 = vpop.permute.xlu1 %402 }
  0xd5   :  { %495 = vst.msk [vmem:[%s1103_s3 + $0xe1] sm:$0xff] %vm92_vm2, %v403_v54 }
  0xd7   :  { %v401_v55 = vpop.permute.xlu0 %400 }
  0xd8   :  { %494 = vst.msk [vmem:[%s1103_s3 + $0xd9] sm:$0xff] %vm92_vm2, %v401_v55 }
  0xd9   :  { %412 = vsyncpa [#allocation3], 1 }
  0xda   :  { %413 = vsyncpa [#allocation4], 1 }
  0xdb   :  { %414 = vsyncpa [#allocation6], 1 }

</bundles_post_ra>
